<compile_context>
chip_gen: v7x
topology: tpu7x:2x2x1
jax: 0.10.0
libtpu: 0.0.40
codegen_flags: <defaults>
</compile_context>

<pallas_src>
import functools
import math

import jax
import jax.numpy as jnp
from jax import lax
from jax.experimental import pallas as pl
from jax.experimental.pallas import tpu as pltpu

LANE = 128


def _if_kernel(x_ref, spike_ref, v_out_ref, v_ref, *, v_threshold, v_reset, tc):
    """One (T-chunk, feature-tile) slab of the IF recurrence.

    x_ref:     (tc, tr, 128) input currents
    spike_ref: (tc, tr, 128) output spikes
    v_out_ref: (tr, 128)     final membrane potential (written on last chunk)
    v_ref:     (tr, 128)     VMEM scratch carrying v across T-chunks
    """
    t_chunk = pl.program_id(1)

    @pl.when(t_chunk == 0)
    def _():
        # module __init__: self.v = v_reset; v_float_to_tensor -> full_like
        v_ref[...] = jnp.full_like(v_ref, v_reset)

    def one_step(t):
        v = v_ref[...] + x_ref[t]                       # charge
        fired = v >= v_threshold                        # fire (eval heaviside)
        spike_ref[t] = fired.astype(spike_ref.dtype)
        v_ref[...] = jnp.where(fired, v_reset, v)       # hard reset (single select)

    if tc <= 16:
        for t in range(tc):                             # full unroll, small chunk
            one_step(t)
    else:
        u = next(d for d in (8, 4, 2, 1) if tc % d == 0)  # manual partial unroll

        def body(i, carry):
            for j in range(u):
                one_step(i * u + j)
            return carry

        lax.fori_loop(0, tc // u, body, 0)

    @pl.when(t_chunk == pl.num_programs(1) - 1)
    def _():
        v_out_ref[...] = v_ref[...]


def if_node_multi_step(x_seq, *, v_threshold=1.0, v_reset=0.0,
                       spike_dtype=None, donate_input=False):
    """IFNode multi-step eval forward (hard reset). x_seq: [T, N, *] float.

    Returns (spike_seq [T, N, *], v_final [N, *]).
    """
    orig_shape = x_seq.shape
    T = int(orig_shape[0])
    feat_shape = orig_shape[1:]
    M = math.prod(feat_shape)
    dtype = x_seq.dtype
    itemsize = jnp.dtype(dtype).itemsize
    out_dtype = jnp.dtype(dtype if spike_dtype is None else spike_dtype)
    out_itemsize = out_dtype.itemsize

    # dtype-aware native tiling: (8,128) f32, (16,128) bf16/f16, (32,128) int8
    sublane = max(8, 32 // itemsize)

    # ---- VMEM budget from the actual chip (not the scoped-VMEM default) ----
    try:
        vmem_cap = int(pltpu.get_tpu_info().vmem_capacity_bytes)
    except Exception:
        vmem_cap = 64 * 1024 * 1024          # conservative fallback (v7x per-TC)
    budget = int(vmem_cap * 0.70)            # ~45 MiB on v7x, ~90 MiB on v5e/v6e
    vmem_limit = int(vmem_cap * 0.90)

    # ---- Feature rows, padded only to the native (sublane, 128) tile ----
    R = pl.cdiv(M, LANE)
    R_pad = ((R + sublane - 1) // sublane) * sublane
    M_pad = R_pad * LANE

    # VMEM bytes per sublane-row of one tile holding `tc` time steps:
    #   2x double-buffered x + 2x double-buffered spike + v scratch + 2x v_out
    per_t_bytes = 2 * LANE * (itemsize + out_itemsize)
    fixed_bytes = 3 * LANE * itemsize

    # ---- T-chunk size: largest divisor of T keeping tr >= min_tr in budget ----
    min_tr = min(R_pad, ((256 + sublane - 1) // sublane) * sublane)
    max_tc = max(1, (budget // min_tr - fixed_bytes) // per_t_bytes)
    if max_tc >= T:
        tc = T
    else:
        tc = 1
        for d in range(int(max_tc), 0, -1):
            if T % d == 0:
                tc = d
                break
    num_t_chunks = T // tc

    # ---- Feature-tile rows ----
    tr_cap = budget // (per_t_bytes * tc + fixed_bytes)
    tr_cap = max(sublane, (tr_cap // sublane) * sublane)
    tr_cap = min(tr_cap, R_pad)
    # keep >= 4 feature tiles when data is large enough (>= 2 per TC on v7x)
    tr_tiles = ((pl.cdiv(R_pad, 4) + sublane - 1) // sublane) * sublane
    tr = min(tr_cap, max(min_tr, tr_tiles))
    # prefer a tr that evenly divides R_pad (avoids a ragged last tile), but
    # only within a 2x window so pathological R_pad cannot collapse tr
    if R_pad % tr != 0:
        lo = max(sublane, (tr // 2 // sublane) * sublane)
        for cand in range(tr, lo - 1, -sublane):
            if R_pad % cand == 0:
                tr = cand
                break
    num_m_tiles = pl.cdiv(R_pad, tr)

    # ---- Layout: [T, M] -> [T, R_pad, 128]; pad only in the rare unaligned case
    x_flat = x_seq.reshape(T, M)
    if M_pad != M:
        x_flat = jnp.pad(x_flat, ((0, 0), (0, M_pad - M)))
    x3d = x_flat.reshape(T, R_pad, LANE)

    kernel = functools.partial(
        _if_kernel,
        v_threshold=float(v_threshold),
        v_reset=float(v_reset),
        tc=tc,
    )

    aliases = {0: 0} if (donate_input and out_dtype == dtype) else {}

    spike3d, v2d = pl.pallas_call(
        kernel,
        out_shape=(
            jax.ShapeDtypeStruct((T, R_pad, LANE), out_dtype),
            jax.ShapeDtypeStruct((R_pad, LANE), dtype),
        ),
        grid_spec=pltpu.PrefetchScalarGridSpec(
            num_scalar_prefetch=0,
            grid=(num_m_tiles, num_t_chunks),        # feature tiles x T-chunks
            in_specs=[
                pl.BlockSpec((tc, tr, LANE), lambda m, t: (t, m, 0)),
            ],
            out_specs=[
                pl.BlockSpec((tc, tr, LANE), lambda m, t: (t, m, 0)),
                pl.BlockSpec((tr, LANE), lambda m, t: (m, 0)),
            ],
            scratch_shapes=[pltpu.VMEM((tr, LANE), dtype)],
        ),
        compiler_params=pltpu.CompilerParams(
            dimension_semantics=("parallel", "arbitrary"),
            vmem_limit_bytes=vmem_limit,
        ),
        input_output_aliases=aliases,
    )(x3d)

    if M_pad != M:
        spike_seq = spike3d.reshape(T, M_pad)[:, :M].reshape(orig_shape)
        v_final = v2d.reshape(M_pad)[:M].reshape(feat_shape)
    else:
        spike_seq = spike3d.reshape(orig_shape)
        v_final = v2d.reshape(feat_shape)
    return spike_seq, v_final


def _if_node_multi_step_ref(x_seq, v_threshold=1.0, v_reset=0.0):
    """Pure-JAX reference mirroring jit_eval_multi_step_forward_hard_reset."""
    def step(v, x):
        v = v + x
        spike = (v >= v_threshold).astype(x.dtype)
        v = v_reset * spike + (1.0 - spike) * v
        return v, spike

    v0 = jnp.full(x_seq.shape[1:], v_reset, x_seq.dtype)
    v_final, spike_seq = jax.lax.scan(step, v0, x_seq)
    return spike_seq, v_final


if __name__ == "__main__":
    key = jax.random.PRNGKey(0)

    # Case 1: tile-aligned feature size (typical conv feature map).
    T, N, C, H, W = 8, 2, 4, 16, 16
    # Scale so some neurons cross threshold at various time steps.
    x_seq = jax.random.uniform(key, (T, N, C, H, W), dtype=jnp.float32) * 0.6

    spike_seq, v_final = if_node_multi_step(x_seq, v_threshold=1.0, v_reset=0.0)
    jax.block_until_ready(spike_seq)
    jax.block_until_ready(v_final)

    spike_ref, v_ref = _if_node_multi_step_ref(x_seq, 1.0, 0.0)
    assert spike_seq.shape == (T, N, C, H, W)
    assert v_final.shape == (N, C, H, W)
    assert jnp.allclose(spike_seq, spike_ref)
    assert jnp.allclose(v_final, v_ref)

    # Case 2: non-aligned feature size (exercises the rare pad/slice path).
    x2 = jax.random.uniform(jax.random.PRNGKey(0), (5, 2, 3, 5, 7),
                            dtype=jnp.float32) * 0.8
    s2, v2 = if_node_multi_step(x2, v_threshold=1.0, v_reset=0.0)
    jax.block_until_ready(s2)
    s2_ref, v2_ref = _if_node_multi_step_ref(x2, 1.0, 0.0)
    assert jnp.allclose(s2, s2_ref)
    assert jnp.allclose(v2, v2_ref)

    print("KERNEL_OK")
</pallas_src>

<mosaic_0001>
module attributes {stable_mosaic.version = 11 : i64} {
  func.func @_if_kernel(%arg0: i32, %arg1: i32, %arg2: memref<8x16x128xf32, #tpu.memory_space<vmem>>, %arg3: memref<8x16x128xf32, #tpu.memory_space<vmem>>, %arg4: memref<16x128xf32, #tpu.memory_space<vmem>>, %arg5: memref<16x128xf32, #tpu.memory_space<vmem>>) attributes {dimension_semantics = [#tpu.dimension_semantics<parallel>, #tpu.dimension_semantics<arbitrary>], iteration_bounds = array<i64: 1, 1>, scalar_prefetch = 0 : i64, scratch_operands = 1 : i64, tpu.core_type = #tpu.core_type<tc>, window_params = [{transform_indices = @transform_0, window_bounds = array<i64: 8, 16, 128>}, {transform_indices = @transform_1, window_bounds = array<i64: 8, 16, 128>}, {transform_indices = @transform_2, window_bounds = array<i64: 16, 128>}]} {
    %c0_i32 = arith.constant 0 : i32
    %0 = arith.cmpi eq, %arg1, %c0_i32 : i32
    %1 = arith.extui %0 : i1 to i32
    %c0_i32_0 = arith.constant 0 : i32
    %2 = arith.cmpi ne, %1, %c0_i32_0 : i32
    scf.if %2 {
      %cst_90 = arith.constant 0.000000e+00 : f32
      %118 = vector.broadcast %cst_90 : f32 to vector<16x128xf32>
      %c0_91 = arith.constant 0 : index
      %c0_92 = arith.constant 0 : index
      %119 = vector.load %arg5[%c0_91, %c0_92] : memref<16x128xf32, #tpu.memory_space<vmem>>, vector<16x128xf32>
      tpu.vector_store %arg5[%c0_91, %c0_92], %118 {strides = array<i32>} : memref<16x128xf32, #tpu.memory_space<vmem>>, vector<16x128xf32>,
    } else {
    }
    %c0 = arith.constant 0 : index
    %c0_1 = arith.constant 0 : index
    %3 = vector.load %arg5[%c0, %c0_1] : memref<16x128xf32, #tpu.memory_space<vmem>>, vector<16x128xf32>
    %c0_2 = arith.constant 0 : index
    %c0_3 = arith.constant 0 : index
    %c0_4 = arith.constant 0 : index
    %4 = vector.load %arg2[%c0_2, %c0_3, %c0_4] : memref<8x16x128xf32, #tpu.memory_space<vmem>>, vector<1x16x128xf32>
    %5 = vector.shape_cast %4 : vector<1x16x128xf32> to vector<16x128xf32>
    %6 = arith.addf %3, %5 : vector<16x128xf32>
    %cst = arith.constant 1.000000e+00 : f32
    %7 = vector.broadcast %cst : f32 to vector<16x128xf32>
    %8 = arith.cmpf oge, %6, %7 : vector<16x128xf32>
    %9 = arith.extui %8 : vector<16x128xi1> to vector<16x128xi32>
    %10 = arith.sitofp %9 : vector<16x128xi32> to vector<16x128xf32>
    %c0_5 = arith.constant 0 : index
    %c0_6 = arith.constant 0 : index
    %c0_7 = arith.constant 0 : index
    %11 = vector.load %arg3[%c0_5, %c0_6, %c0_7] : memref<8x16x128xf32, #tpu.memory_space<vmem>>, vector<1x16x128xf32>
    %12 = vector.shape_cast %11 : vector<1x16x128xf32> to vector<16x128xf32>
    %13 = vector.shape_cast %10 : vector<16x128xf32> to vector<1x16x128xf32>
    tpu.vector_store %arg3[%c0_5, %c0_6, %c0_7], %13 {strides = array<i32>} : memref<8x16x128xf32, #tpu.memory_space<vmem>>, vector<1x16x128xf32>,
    %cst_8 = arith.constant 0.000000e+00 : f32
    %14 = vector.broadcast %cst_8 : f32 to vector<16x128xf32>
    %15 = arith.select %8, %14, %6 : vector<16x128xi1>, vector<16x128xf32>
    %c0_9 = arith.constant 0 : index
    %c0_10 = arith.constant 0 : index
    %16 = vector.load %arg5[%c0_9, %c0_10] : memref<16x128xf32, #tpu.memory_space<vmem>>, vector<16x128xf32>
    tpu.vector_store %arg5[%c0_9, %c0_10], %15 {strides = array<i32>} : memref<16x128xf32, #tpu.memory_space<vmem>>, vector<16x128xf32>,
    %c0_11 = arith.constant 0 : index
    %c0_12 = arith.constant 0 : index
    %17 = vector.load %arg5[%c0_11, %c0_12] : memref<16x128xf32, #tpu.memory_space<vmem>>, vector<16x128xf32>
    %c1 = arith.constant 1 : index
    %c0_13 = arith.constant 0 : index
    %c0_14 = arith.constant 0 : index
    %18 = vector.load %arg2[%c1, %c0_13, %c0_14] : memref<8x16x128xf32, #tpu.memory_space<vmem>>, vector<1x16x128xf32>
    %19 = vector.shape_cast %18 : vector<1x16x128xf32> to vector<16x128xf32>
    %20 = arith.addf %17, %19 : vector<16x128xf32>
    %cst_15 = arith.constant 1.000000e+00 : f32
    %21 = vector.broadcast %cst_15 : f32 to vector<16x128xf32>
    %22 = arith.cmpf oge, %20, %21 : vector<16x128xf32>
    %23 = arith.extui %22 : vector<16x128xi1> to vector<16x128xi32>
    %24 = arith.sitofp %23 : vector<16x128xi32> to vector<16x128xf32>
    %c1_16 = arith.constant 1 : index
    %c0_17 = arith.constant 0 : index
    %c0_18 = arith.constant 0 : index
    %25 = vector.load %arg3[%c1_16, %c0_17, %c0_18] : memref<8x16x128xf32, #tpu.memory_space<vmem>>, vector<1x16x128xf32>
    %26 = vector.shape_cast %25 : vector<1x16x128xf32> to vector<16x128xf32>
    %27 = vector.shape_cast %24 : vector<16x128xf32> to vector<1x16x128xf32>
    tpu.vector_store %arg3[%c1_16, %c0_17, %c0_18], %27 {strides = array<i32>} : memref<8x16x128xf32, #tpu.memory_space<vmem>>, vector<1x16x128xf32>,
    %cst_19 = arith.constant 0.000000e+00 : f32
    %28 = vector.broadcast %cst_19 : f32 to vector<16x128xf32>
    %29 = arith.select %22, %28, %20 : vector<16x128xi1>, vector<16x128xf32>
    %c0_20 = arith.constant 0 : index
    %c0_21 = arith.constant 0 : index
    %30 = vector.load %arg5[%c0_20, %c0_21] : memref<16x128xf32, #tpu.memory_space<vmem>>, vector<16x128xf32>
    tpu.vector_store %arg5[%c0_20, %c0_21], %29 {strides = array<i32>} : memref<16x128xf32, #tpu.memory_space<vmem>>, vector<16x128xf32>,
    %c0_22 = arith.constant 0 : index
    %c0_23 = arith.constant 0 : index
    %31 = vector.load %arg5[%c0_22, %c0_23] : memref<16x128xf32, #tpu.memory_space<vmem>>, vector<16x128xf32>
    %c2 = arith.constant 2 : index
    %c0_24 = arith.constant 0 : index
    %c0_25 = arith.constant 0 : index
    %32 = vector.load %arg2[%c2, %c0_24, %c0_25] : memref<8x16x128xf32, #tpu.memory_space<vmem>>, vector<1x16x128xf32>
    %33 = vector.shape_cast %32 : vector<1x16x128xf32> to vector<16x128xf32>
    %34 = arith.addf %31, %33 : vector<16x128xf32>
    %cst_26 = arith.constant 1.000000e+00 : f32
    %35 = vector.broadcast %cst_26 : f32 to vector<16x128xf32>
    %36 = arith.cmpf oge, %34, %35 : vector<16x128xf32>
    %37 = arith.extui %36 : vector<16x128xi1> to vector<16x128xi32>
    %38 = arith.sitofp %37 : vector<16x128xi32> to vector<16x128xf32>
    %c2_27 = arith.constant 2 : index
    %c0_28 = arith.constant 0 : index
    %c0_29 = arith.constant 0 : index
    %39 = vector.load %arg3[%c2_27, %c0_28, %c0_29] : memref<8x16x128xf32, #tpu.memory_space<vmem>>, vector<1x16x128xf32>
    %40 = vector.shape_cast %39 : vector<1x16x128xf32> to vector<16x128xf32>
    %41 = vector.shape_cast %38 : vector<16x128xf32> to vector<1x16x128xf32>
    tpu.vector_store %arg3[%c2_27, %c0_28, %c0_29], %41 {strides = array<i32>} : memref<8x16x128xf32, #tpu.memory_space<vmem>>, vector<1x16x128xf32>,
    %cst_30 = arith.constant 0.000000e+00 : f32
    %42 = vector.broadcast %cst_30 : f32 to vector<16x128xf32>
    %43 = arith.select %36, %42, %34 : vector<16x128xi1>, vector<16x128xf32>
    %c0_31 = arith.constant 0 : index
    %c0_32 = arith.constant 0 : index
    %44 = vector.load %arg5[%c0_31, %c0_32] : memref<16x128xf32, #tpu.memory_space<vmem>>, vector<16x128xf32>
    tpu.vector_store %arg5[%c0_31, %c0_32], %43 {strides = array<i32>} : memref<16x128xf32, #tpu.memory_space<vmem>>, vector<16x128xf32>,
    %c0_33 = arith.constant 0 : index
    %c0_34 = arith.constant 0 : index
    %45 = vector.load %arg5[%c0_33, %c0_34] : memref<16x128xf32, #tpu.memory_space<vmem>>, vector<16x128xf32>
    %c3 = arith.constant 3 : index
    %c0_35 = arith.constant 0 : index
    %c0_36 = arith.constant 0 : index
    %46 = vector.load %arg2[%c3, %c0_35, %c0_36] : memref<8x16x128xf32, #tpu.memory_space<vmem>>, vector<1x16x128xf32>
    %47 = vector.shape_cast %46 : vector<1x16x128xf32> to vector<16x128xf32>
    %48 = arith.addf %45, %47 : vector<16x128xf32>
    %cst_37 = arith.constant 1.000000e+00 : f32
    %49 = vector.broadcast %cst_37 : f32 to vector<16x128xf32>
    %50 = arith.cmpf oge, %48, %49 : vector<16x128xf32>
    %51 = arith.extui %50 : vector<16x128xi1> to vector<16x128xi32>
    %52 = arith.sitofp %51 : vector<16x128xi32> to vector<16x128xf32>
    %c3_38 = arith.constant 3 : index
    %c0_39 = arith.constant 0 : index
    %c0_40 = arith.constant 0 : index
    %53 = vector.load %arg3[%c3_38, %c0_39, %c0_40] : memref<8x16x128xf32, #tpu.memory_space<vmem>>, vector<1x16x128xf32>
    %54 = vector.shape_cast %53 : vector<1x16x128xf32> to vector<16x128xf32>
    %55 = vector.shape_cast %52 : vector<16x128xf32> to vector<1x16x128xf32>
    tpu.vector_store %arg3[%c3_38, %c0_39, %c0_40], %55 {strides = array<i32>} : memref<8x16x128xf32, #tpu.memory_space<vmem>>, vector<1x16x128xf32>,
    %cst_41 = arith.constant 0.000000e+00 : f32
    %56 = vector.broadcast %cst_41 : f32 to vector<16x128xf32>
    %57 = arith.select %50, %56, %48 : vector<16x128xi1>, vector<16x128xf32>
    %c0_42 = arith.constant 0 : index
    %c0_43 = arith.constant 0 : index
    %58 = vector.load %arg5[%c0_42, %c0_43] : memref<16x128xf32, #tpu.memory_space<vmem>>, vector<16x128xf32>
    tpu.vector_store %arg5[%c0_42, %c0_43], %57 {strides = array<i32>} : memref<16x128xf32, #tpu.memory_space<vmem>>, vector<16x128xf32>,
    %c0_44 = arith.constant 0 : index
    %c0_45 = arith.constant 0 : index
    %59 = vector.load %arg5[%c0_44, %c0_45] : memref<16x128xf32, #tpu.memory_space<vmem>>, vector<16x128xf32>
    %c4 = arith.constant 4 : index
    %c0_46 = arith.constant 0 : index
    %c0_47 = arith.constant 0 : index
    %60 = vector.load %arg2[%c4, %c0_46, %c0_47] : memref<8x16x128xf32, #tpu.memory_space<vmem>>, vector<1x16x128xf32>
    %61 = vector.shape_cast %60 : vector<1x16x128xf32> to vector<16x128xf32>
    %62 = arith.addf %59, %61 : vector<16x128xf32>
    %cst_48 = arith.constant 1.000000e+00 : f32
    %63 = vector.broadcast %cst_48 : f32 to vector<16x128xf32>
    %64 = arith.cmpf oge, %62, %63 : vector<16x128xf32>
    %65 = arith.extui %64 : vector<16x128xi1> to vector<16x128xi32>
    %66 = arith.sitofp %65 : vector<16x128xi32> to vector<16x128xf32>
    %c4_49 = arith.constant 4 : index
    %c0_50 = arith.constant 0 : index
    %c0_51 = arith.constant 0 : index
    %67 = vector.load %arg3[%c4_49, %c0_50, %c0_51] : memref<8x16x128xf32, #tpu.memory_space<vmem>>, vector<1x16x128xf32>
    %68 = vector.shape_cast %67 : vector<1x16x128xf32> to vector<16x128xf32>
    %69 = vector.shape_cast %66 : vector<16x128xf32> to vector<1x16x128xf32>
    tpu.vector_store %arg3[%c4_49, %c0_50, %c0_51], %69 {strides = array<i32>} : memref<8x16x128xf32, #tpu.memory_space<vmem>>, vector<1x16x128xf32>,
    %cst_52 = arith.constant 0.000000e+00 : f32
    %70 = vector.broadcast %cst_52 : f32 to vector<16x128xf32>
    %71 = arith.select %64, %70, %62 : vector<16x128xi1>, vector<16x128xf32>
    %c0_53 = arith.constant 0 : index
    %c0_54 = arith.constant 0 : index
    %72 = vector.load %arg5[%c0_53, %c0_54] : memref<16x128xf32, #tpu.memory_space<vmem>>, vector<16x128xf32>
    tpu.vector_store %arg5[%c0_53, %c0_54], %71 {strides = array<i32>} : memref<16x128xf32, #tpu.memory_space<vmem>>, vector<16x128xf32>,
    %c0_55 = arith.constant 0 : index
    %c0_56 = arith.constant 0 : index
    %73 = vector.load %arg5[%c0_55, %c0_56] : memref<16x128xf32, #tpu.memory_space<vmem>>, vector<16x128xf32>
    %c5 = arith.constant 5 : index
    %c0_57 = arith.constant 0 : index
    %c0_58 = arith.constant 0 : index
    %74 = vector.load %arg2[%c5, %c0_57, %c0_58] : memref<8x16x128xf32, #tpu.memory_space<vmem>>, vector<1x16x128xf32>
    %75 = vector.shape_cast %74 : vector<1x16x128xf32> to vector<16x128xf32>
    %76 = arith.addf %73, %75 : vector<16x128xf32>
    %cst_59 = arith.constant 1.000000e+00 : f32
    %77 = vector.broadcast %cst_59 : f32 to vector<16x128xf32>
    %78 = arith.cmpf oge, %76, %77 : vector<16x128xf32>
    %79 = arith.extui %78 : vector<16x128xi1> to vector<16x128xi32>
    %80 = arith.sitofp %79 : vector<16x128xi32> to vector<16x128xf32>
    %c5_60 = arith.constant 5 : index
    %c0_61 = arith.constant 0 : index
    %c0_62 = arith.constant 0 : index
    %81 = vector.load %arg3[%c5_60, %c0_61, %c0_62] : memref<8x16x128xf32, #tpu.memory_space<vmem>>, vector<1x16x128xf32>
    %82 = vector.shape_cast %81 : vector<1x16x128xf32> to vector<16x128xf32>
    %83 = vector.shape_cast %80 : vector<16x128xf32> to vector<1x16x128xf32>
    tpu.vector_store %arg3[%c5_60, %c0_61, %c0_62], %83 {strides = array<i32>} : memref<8x16x128xf32, #tpu.memory_space<vmem>>, vector<1x16x128xf32>,
    %cst_63 = arith.constant 0.000000e+00 : f32
    %84 = vector.broadcast %cst_63 : f32 to vector<16x128xf32>
    %85 = arith.select %78, %84, %76 : vector<16x128xi1>, vector<16x128xf32>
    %c0_64 = arith.constant 0 : index
    %c0_65 = arith.constant 0 : index
    %86 = vector.load %arg5[%c0_64, %c0_65] : memref<16x128xf32, #tpu.memory_space<vmem>>, vector<16x128xf32>
    tpu.vector_store %arg5[%c0_64, %c0_65], %85 {strides = array<i32>} : memref<16x128xf32, #tpu.memory_space<vmem>>, vector<16x128xf32>,
    %c0_66 = arith.constant 0 : index
    %c0_67 = arith.constant 0 : index
    %87 = vector.load %arg5[%c0_66, %c0_67] : memref<16x128xf32, #tpu.memory_space<vmem>>, vector<16x128xf32>
    %c6 = arith.constant 6 : index
    %c0_68 = arith.constant 0 : index
    %c0_69 = arith.constant 0 : index
    %88 = vector.load %arg2[%c6, %c0_68, %c0_69] : memref<8x16x128xf32, #tpu.memory_space<vmem>>, vector<1x16x128xf32>
    %89 = vector.shape_cast %88 : vector<1x16x128xf32> to vector<16x128xf32>
    %90 = arith.addf %87, %89 : vector<16x128xf32>
    %cst_70 = arith.constant 1.000000e+00 : f32
    %91 = vector.broadcast %cst_70 : f32 to vector<16x128xf32>
    %92 = arith.cmpf oge, %90, %91 : vector<16x128xf32>
    %93 = arith.extui %92 : vector<16x128xi1> to vector<16x128xi32>
    %94 = arith.sitofp %93 : vector<16x128xi32> to vector<16x128xf32>
    %c6_71 = arith.constant 6 : index
    %c0_72 = arith.constant 0 : index
    %c0_73 = arith.constant 0 : index
    %95 = vector.load %arg3[%c6_71, %c0_72, %c0_73] : memref<8x16x128xf32, #tpu.memory_space<vmem>>, vector<1x16x128xf32>
    %96 = vector.shape_cast %95 : vector<1x16x128xf32> to vector<16x128xf32>
    %97 = vector.shape_cast %94 : vector<16x128xf32> to vector<1x16x128xf32>
    tpu.vector_store %arg3[%c6_71, %c0_72, %c0_73], %97 {strides = array<i32>} : memref<8x16x128xf32, #tpu.memory_space<vmem>>, vector<1x16x128xf32>,
    %cst_74 = arith.constant 0.000000e+00 : f32
    %98 = vector.broadcast %cst_74 : f32 to vector<16x128xf32>
    %99 = arith.select %92, %98, %90 : vector<16x128xi1>, vector<16x128xf32>
    %c0_75 = arith.constant 0 : index
    %c0_76 = arith.constant 0 : index
    %100 = vector.load %arg5[%c0_75, %c0_76] : memref<16x128xf32, #tpu.memory_space<vmem>>, vector<16x128xf32>
    tpu.vector_store %arg5[%c0_75, %c0_76], %99 {strides = array<i32>} : memref<16x128xf32, #tpu.memory_space<vmem>>, vector<16x128xf32>,
    %c0_77 = arith.constant 0 : index
    %c0_78 = arith.constant 0 : index
    %101 = vector.load %arg5[%c0_77, %c0_78] : memref<16x128xf32, #tpu.memory_space<vmem>>, vector<16x128xf32>
    %c7 = arith.constant 7 : index
    %c0_79 = arith.constant 0 : index
    %c0_80 = arith.constant 0 : index
    %102 = vector.load %arg2[%c7, %c0_79, %c0_80] : memref<8x16x128xf32, #tpu.memory_space<vmem>>, vector<1x16x128xf32>
    %103 = vector.shape_cast %102 : vector<1x16x128xf32> to vector<16x128xf32>
    %104 = arith.addf %101, %103 : vector<16x128xf32>
    %cst_81 = arith.constant 1.000000e+00 : f32
    %105 = vector.broadcast %cst_81 : f32 to vector<16x128xf32>
    %106 = arith.cmpf oge, %104, %105 : vector<16x128xf32>
    %107 = arith.extui %106 : vector<16x128xi1> to vector<16x128xi32>
    %108 = arith.sitofp %107 : vector<16x128xi32> to vector<16x128xf32>
    %c7_82 = arith.constant 7 : index
    %c0_83 = arith.constant 0 : index
    %c0_84 = arith.constant 0 : index
    %109 = vector.load %arg3[%c7_82, %c0_83, %c0_84] : memref<8x16x128xf32, #tpu.memory_space<vmem>>, vector<1x16x128xf32>
    %110 = vector.shape_cast %109 : vector<1x16x128xf32> to vector<16x128xf32>
    %111 = vector.shape_cast %108 : vector<16x128xf32> to vector<1x16x128xf32>
    tpu.vector_store %arg3[%c7_82, %c0_83, %c0_84], %111 {strides = array<i32>} : memref<8x16x128xf32, #tpu.memory_space<vmem>>, vector<1x16x128xf32>,
    %cst_85 = arith.constant 0.000000e+00 : f32
    %112 = vector.broadcast %cst_85 : f32 to vector<16x128xf32>
    %113 = arith.select %106, %112, %104 : vector<16x128xi1>, vector<16x128xf32>
    %c0_86 = arith.constant 0 : index
    %c0_87 = arith.constant 0 : index
    %114 = vector.load %arg5[%c0_86, %c0_87] : memref<16x128xf32, #tpu.memory_space<vmem>>, vector<16x128xf32>
    tpu.vector_store %arg5[%c0_86, %c0_87], %113 {strides = array<i32>} : memref<16x128xf32, #tpu.memory_space<vmem>>, vector<16x128xf32>,
    %c0_i32_88 = arith.constant 0 : i32
    %115 = arith.cmpi eq, %arg1, %c0_i32_88 : i32
    %116 = arith.extui %115 : i1 to i32
    %c0_i32_89 = arith.constant 0 : i32
    %117 = arith.cmpi ne, %116, %c0_i32_89 : i32
    scf.if %117 {
      %c0_90 = arith.constant 0 : index
      %c0_91 = arith.constant 0 : index
      %118 = vector.load %arg5[%c0_90, %c0_91] : memref<16x128xf32, #tpu.memory_space<vmem>>, vector<16x128xf32>
      %c0_92 = arith.constant 0 : index
      %c0_93 = arith.constant 0 : index
      %119 = vector.load %arg4[%c0_92, %c0_93] : memref<16x128xf32, #tpu.memory_space<vmem>>, vector<16x128xf32>
      tpu.vector_store %arg4[%c0_92, %c0_93], %118 {strides = array<i32>} : memref<16x128xf32, #tpu.memory_space<vmem>>, vector<16x128xf32>,
    } else {
    }
    return
  }
  func.func @transform_0(%arg0: i32, %arg1: i32) -> (i32, i32, i32) {
    %c0_i32 = arith.constant 0 : i32
    %c0_i32_0 = arith.constant 0 : i32
    return %arg1, %arg0, %c0_i32 : i32, i32, i32
  }
  func.func @transform_1(%arg0: i32, %arg1: i32) -> (i32, i32, i32) {
    %c0_i32 = arith.constant 0 : i32
    %c0_i32_0 = arith.constant 0 : i32
    return %arg1, %arg0, %c0_i32 : i32, i32, i32
  }
  func.func @transform_2(%arg0: i32, %arg1: i32) -> (i32, i32) {
    %c0_i32 = arith.constant 0 : i32
    %c0_i32_0 = arith.constant 0 : i32
    return %arg0, %c0_i32 : i32, i32
  }
}

</mosaic_0001>

<bundles_post_ra>
// kernel: tpu_custom_call.1
= control target key start
LH: loop header
LB: loop body
LE: loop exit
PB: predicated region body
PF: predicated region fallthrough
CT: control target
= control target key end

     0   :  { %8 = vsyncpa [#allocation4], 0  ;;  %s413_s0 = inlined_call_operand.hbm [shape: f32[8,16,128], index: 0, kind: input, shape index: {}]   ;;  %s414_s1 = inlined_call_operand.hbm [shape: f32[8,16,128], index: 1, kind: output, shape index: {0}]   ;;  %s415_s2 = inlined_call_operand.hbm [shape: f32[16,128], index: 2, kind: output, shape index: {1}]  }
   0x1   :  { %9 = vsyncpa [#allocation5], 0 }
   0x2   :  { %10 = vsyncpa [#allocation8], 0  ;;  %s324_s9 = smov [#allocation3]   ;;  %s252_s13 = scalar_lea.hbm %s413_s0, 2048 }
   0x3   :  { %s16_s10 = sshll.u32 %s324_s9, 4  ;;  %p253_p0 = scmp.ne.s32.totalorder %s413_s0, %s252_s13  ;;  %s17_s10 = int_to_ptr.vmem [resolvable:$true] %s16_s10 }
   0x4   :  { %p256_p1 = scmp.lt.u32.totalorder %s252_s13, %s413_s0 }
   0x6   :  { %p258_p2 = pnand %p256_p1, %p253_p0 }
   0x8   :  { %261 = shalt.err (!%p258_p2)
}
   0x9   :  { %s262_s18 = scalar_lea.vmem %s17_s10, 2048  ;;  %p267_p4 = scmp.lt.s32.totalorder %s17_s10, %s17_s10 }
   0xa   :  { %p263_p3 = scmp.ne.s32.totalorder %s17_s10, %s262_s18  ;;  %p268_p5 = scmp.lt.s32.totalorder %s262_s18, %s262_s18 }
   0xc   :  { %p269_p6 = por %p268_p5, %p267_p4 }
   0xe   :  { %p270_p7 = pnand %p269_p6, %p263_p3 }
  0x10   :  { %273 = shalt.err (!%p270_p7)
}
  0x11   :  { %s325_s19 = smov 128   ;;  %s326_s20 = smov 8  }
  0x12   :  { %22 = dma.hbm_to_vmem [thread:$0]  %s413_s0, 2048, %s17_s10, [#allocation4], %s325_s19, %s325_s19, %s326_s20  }
  0x13   :  { %318 = dma.done.wait [#allocation4], 2048  }
  0x14   :  { %319 = vsyncadd [#allocation4], 4294965248  ;;  %v34_v0 = vld [vmem:[#allocation3] sm:$0xff]  ;;  %v35_v1 = vld [vmem:[#allocation3 + $0x8] sm:$0xff]  ;;  %v327_v4 = vmov 0.0   ;;  %s328_s0 = smov [#allocation6]  }
  0x15   :  { %v53_v2 = vld [vmem:[#allocation3 + $0x10] sm:$0xff]  ;;  %vm38_vm0 = vcmp.ge.f32.partialorder %v34_v0, 1.0  ;;  %vm39_vm1 = vcmp.ge.f32.partialorder %v35_v1, 1.0  ;;  %v54_v3 = vld [vmem:[#allocation3 + $0x18] sm:$0xff]  ;;  %v73_v11 = vld [vmem:[#allocation3 + $0x20] sm:$0xff]  ;;  %s202_s23 = sshll.u32 %s328_s0, 4  ;;  %s203_s23 = int_to_ptr.vmem [resolvable:$true] %s202_s23 }
  0x16   :  { %v230_v5 = vsel %vm38_vm0, 1.0, %v327_v4  ;;  %v46_v6 = vsel %vm38_vm0, 0.0, %v34_v0  ;;  %v231_v7 = vsel %vm39_vm1, 1.0, %v327_v4  ;;  %v47_v8 = vsel %vm39_vm1, 0.0, %v35_v1  ;;  %v74_v12 = vld [vmem:[#allocation3 + $0x28] sm:$0xff]  ;;  %v93_v19 = vld [vmem:[#allocation3 + $0x30] sm:$0xff]  ;;  %p279_p9 = scmp.lt.s32.totalorder %s203_s23, %s203_s23 }
  0x17   :  { %44 = vst [vmem:[#allocation6] sm:$0xff] %v230_v5  ;;  %45 = vst [vmem:[#allocation6 + $0x8] sm:$0xff] %v231_v7  ;;  %v55_v9 = vadd.f32 %v53_v2, %v46_v6  ;;  %v56_v10 = vadd.f32 %v54_v3, %v47_v8  ;;  %v94_v20 = vld [vmem:[#allocation3 + $0x38] sm:$0xff]  ;;  %v113_v27 = vld [vmem:[#allocation3 + $0x40] sm:$0xff]  ;;  %s329_s24 = smov [#allocation7]   ;;  %s274_s26 = scalar_lea.vmem %s203_s23, 2048 }
  0x18   :  { %v114_v28 = vld [vmem:[#allocation3 + $0x48] sm:$0xff]  ;;  %v133_v35 = vld [vmem:[#allocation3 + $0x50] sm:$0xff]  ;;  %v134_v36 = vld [vmem:[#allocation3 + $0x58] sm:$0xff]  ;;  %s214_s25 = sshll.u32 %s329_s24, 4  ;;  %p275_p8 = scmp.ne.s32.totalorder %s203_s23, %s274_s26  ;;  %s376_s25 = int_to_ptr.vmem [resolvable:$true] %s214_s25 }
  0x19   :  { %vm57_vm2 = vcmp.ge.f32.partialorder %v55_v9, 1.0  ;;  %vm58_vm3 = vcmp.ge.f32.partialorder %v56_v10, 1.0  ;;  %v153_v43 = vld [vmem:[#allocation3 + $0x60] sm:$0xff]  ;;  %v154_v44 = vld [vmem:[#allocation3 + $0x68] sm:$0xff]  ;;  %v173_v51 = vld [vmem:[#allocation3 + $0x70] sm:$0xff]  ;;  %p280_p10 = scmp.lt.s32.totalorder %s274_s26, %s274_s26 }
  0x1a   :  { %v232_v13 = vsel %vm57_vm2, 1.0, %v327_v4  ;;  %v66_v14 = vsel %vm57_vm2, 0.0, %v55_v9  ;;  %v233_v15 = vsel %vm58_vm3, 1.0, %v327_v4  ;;  %v67_v16 = vsel %vm58_vm3, 0.0, %v56_v10  ;;  %v174_v52 = vld [vmem:[#allocation3 + $0x78] sm:$0xff] }
  0x1b   :  { %64 = vst [vmem:[#allocation6 + $0x10] sm:$0xff] %v232_v13  ;;  %65 = vst [vmem:[#allocation6 + $0x18] sm:$0xff] %v233_v15  ;;  %v75_v17 = vadd.f32 %v73_v11, %v66_v14  ;;  %v76_v18 = vadd.f32 %v74_v12, %v67_v16  ;;  %p281_p11 = por %p280_p10, %p279_p9 }
  0x1d   :  { %vm77_vm4 = vcmp.ge.f32.partialorder %v75_v17, 1.0  ;;  %vm78_vm5 = vcmp.ge.f32.partialorder %v76_v18, 1.0  ;;  %p282_p12 = pnand %p281_p11, %p275_p8 }
  0x1e   :  { %v234_v21 = vsel %vm77_vm4, 1.0, %v327_v4  ;;  %v86_v22 = vsel %vm77_vm4, 0.0, %v75_v17  ;;  %v235_v23 = vsel %vm78_vm5, 1.0, %v327_v4  ;;  %v87_v24 = vsel %vm78_vm5, 0.0, %v76_v18 }
  0x1f   :  { %84 = vst [vmem:[#allocation6 + $0x20] sm:$0xff] %v234_v21  ;;  %85 = vst [vmem:[#allocation6 + $0x28] sm:$0xff] %v235_v23  ;;  %v95_v25 = vadd.f32 %v93_v19, %v86_v22  ;;  %v96_v26 = vadd.f32 %v94_v20, %v87_v24 }
  0x21   :  { %vm97_vm6 = vcmp.ge.f32.partialorder %v95_v25, 1.0  ;;  %vm98_vm7 = vcmp.ge.f32.partialorder %v96_v26, 1.0 }
  0x22   :  { %v236_v29 = vsel %vm97_vm6, 1.0, %v327_v4  ;;  %v106_v30 = vsel %vm97_vm6, 0.0, %v95_v25  ;;  %v237_v31 = vsel %vm98_vm7, 1.0, %v327_v4  ;;  %v107_v32 = vsel %vm98_vm7, 0.0, %v96_v26 }
  0x23   :  { %104 = vst [vmem:[#allocation6 + $0x30] sm:$0xff] %v236_v29  ;;  %105 = vst [vmem:[#allocation6 + $0x38] sm:$0xff] %v237_v31  ;;  %v115_v33 = vadd.f32 %v113_v27, %v106_v30  ;;  %v116_v34 = vadd.f32 %v114_v28, %v107_v32 }
  0x25   :  { %vm117_vm8 = vcmp.ge.f32.partialorder %v115_v33, 1.0  ;;  %vm118_vm9 = vcmp.ge.f32.partialorder %v116_v34, 1.0 }
  0x26   :  { %v238_v37 = vsel %vm117_vm8, 1.0, %v327_v4  ;;  %v126_v38 = vsel %vm117_vm8, 0.0, %v115_v33  ;;  %v239_v39 = vsel %vm118_vm9, 1.0, %v327_v4  ;;  %v127_v40 = vsel %vm118_vm9, 0.0, %v116_v34 }
  0x27   :  { %124 = vst [vmem:[#allocation6 + $0x40] sm:$0xff] %v238_v37  ;;  %125 = vst [vmem:[#allocation6 + $0x48] sm:$0xff] %v239_v39  ;;  %v135_v41 = vadd.f32 %v133_v35, %v126_v38  ;;  %v136_v42 = vadd.f32 %v134_v36, %v127_v40 }
  0x29   :  { %vm137_vm10 = vcmp.ge.f32.partialorder %v135_v41, 1.0  ;;  %vm138_vm11 = vcmp.ge.f32.partialorder %v136_v42, 1.0 }
  0x2a   :  { %v240_v45 = vsel %vm137_vm10, 1.0, %v327_v4  ;;  %v146_v46 = vsel %vm137_vm10, 0.0, %v135_v41  ;;  %v241_v47 = vsel %vm138_vm11, 1.0, %v327_v4  ;;  %v147_v48 = vsel %vm138_vm11, 0.0, %v136_v42 }
  0x2b   :  { %144 = vst [vmem:[#allocation6 + $0x50] sm:$0xff] %v240_v45  ;;  %145 = vst [vmem:[#allocation6 + $0x58] sm:$0xff] %v241_v47  ;;  %v155_v49 = vadd.f32 %v153_v43, %v146_v46  ;;  %v156_v50 = vadd.f32 %v154_v44, %v147_v48 }
  0x2d   :  { %vm157_vm12 = vcmp.ge.f32.partialorder %v155_v49, 1.0  ;;  %vm158_vm13 = vcmp.ge.f32.partialorder %v156_v50, 1.0 }
  0x2e   :  { %v242_v53 = vsel %vm157_vm12, 1.0, %v327_v4  ;;  %v166_v54 = vsel %vm157_vm12, 0.0, %v155_v49  ;;  %v243_v55 = vsel %vm158_vm13, 1.0, %v327_v4  ;;  %v167_v56 = vsel %vm158_vm13, 0.0, %v156_v50 }
  0x2f   :  { %164 = vst [vmem:[#allocation6 + $0x60] sm:$0xff] %v242_v53  ;;  %165 = vst [vmem:[#allocation6 + $0x68] sm:$0xff] %v243_v55  ;;  %v175_v57 = vadd.f32 %v173_v51, %v166_v54  ;;  %v176_v58 = vadd.f32 %v174_v52, %v167_v56 }
  0x31   :  { %vm177_vm14 = vcmp.ge.f32.partialorder %v175_v57, 1.0  ;;  %vm178_vm15 = vcmp.ge.f32.partialorder %v176_v58, 1.0 }
  0x32   :  { %v244_v59 = vsel %vm177_vm14, 1.0, %v327_v4  ;;  %v245_v60 = vsel %vm178_vm15, 1.0, %v327_v4  ;;  %v186_v61 = vsel %vm177_vm14, 0.0, %v175_v57  ;;  %v187_v62 = vsel %vm178_vm15, 0.0, %v176_v58 }
  0x33   :  { %184 = vst [vmem:[#allocation6 + $0x70] sm:$0xff] %v244_v59  ;;  %185 = vst [vmem:[#allocation6 + $0x78] sm:$0xff] %v245_v60 }
  0x34   :  { %195 = vst [vmem:[#allocation7] sm:$0xff] %v186_v61  ;;  %196 = vst [vmem:[#allocation7 + $0x8] sm:$0xff] %v187_v62 }
  0x35   :  { %285 = shalt.err (!%p282_p12)
}
  0x36   :  { %s286_s29 = scalar_lea.hbm %s414_s1, 2048 }
  0x37   :  { %p287_p13 = scmp.ne.s32.totalorder %s414_s1, %s286_s29  ;;  %p290_p0 = scmp.lt.u32.totalorder %s286_s29, %s414_s1 }
  0x39   :  { %p292_p1 = pnand %p290_p0, %p287_p13 }
  0x3b   :  { %295 = shalt.err (!%p292_p1)
}
  0x3c   :  { %208 = dma.vmem_to_hbm [thread:$0]  %s203_s23, 2048, %s414_s1, [#allocation5], %s325_s19, %s325_s19, %s326_s20  }
  0x3d   :  { %s296_s8 = scalar_lea.vmem %s376_s25, 256  ;;  %p301_p3 = scmp.lt.s32.totalorder %s376_s25, %s376_s25 }
  0x3e   :  { %p297_p2 = scmp.ne.s32.totalorder %s376_s25, %s296_s8  ;;  %p302_p4 = scmp.lt.s32.totalorder %s296_s8, %s296_s8 }
  0x40   :  { %p303_p5 = por %p302_p4, %p301_p3 }
  0x42   :  { %p304_p6 = pnand %p303_p5, %p297_p2 }
  0x44   :  { %307 = shalt.err (!%p304_p6)
}
  0x45   :  { %s308_s11 = scalar_lea.hbm %s415_s2, 256 }
  0x46   :  { %p309_p7 = scmp.ne.s32.totalorder %s415_s2, %s308_s11  ;;  %p312_p8 = scmp.lt.u32.totalorder %s308_s11, %s415_s2 }
  0x48   :  { %p314_p9 = pnand %p312_p8, %p309_p7 }
  0x4a   :  { %317 = shalt.err (!%p314_p9)
}
  0x4b   :  { %220 = dma.vmem_to_hbm [thread:$0]  %s376_s25, 256, %s415_s2, [#allocation8], %s325_s19, %s325_s19, %s326_s20  }
  0x4c   :  { %320 = dma.done.wait [#allocation5], 2048  }
  0x4d   :  { %321 = vsyncadd [#allocation5], 4294965248 }
  0x4e   :  { %322 = dma.done.wait [#allocation8], 256  }
  0x4f   :  { %323 = vsyncadd [#allocation8], 4294967040 }
  0x50   :  { %227 = vsyncpa [#allocation4], 1 }
  0x51   :  { %228 = vsyncpa [#allocation5], 1 }
  0x52   :  { %229 = vsyncpa [#allocation8], 1 }

</bundles_post_ra>
